<compile_context>
chip_gen: v7x
topology: tpu7x:2x2x1
jax: 0.10.0
libtpu: 0.0.40
codegen_flags: <defaults>
</compile_context>

<pallas_src>
import jax
import jax.numpy as jnp
from jax import lax
from jax.experimental import pallas as pl
from jax.experimental.pallas import tpu as pltpu

BN_EPS = 1e-5


def mlp_kernel(x_ref, w1_ref, gamma_ref, beta_ref, w2_ref, b2_ref, o_ref):
    # x: (B, D) bf16, w1: (D, TH) bf16, gamma/beta: (1, TH) f32,
    # w2: (TH, TP) bf16, b2: (1, TP) f32, o: (B, TP) f32 (VMEM-resident over h)
    h_idx = pl.program_id(1)

    # Fold b2 into the accumulator initialization (output block index is
    # constant over the h axis, so it stays resident in VMEM).
    @pl.when(h_idx == 0)
    def _():
        o_ref[...] = jnp.broadcast_to(b2_ref[...], o_ref.shape)

    # ---- Linear 1 (bf16 MXU operands, fp32 accumulation).  b1 omitted: it is
    # exactly cancelled by the training-mode BatchNorm mean subtraction. ----
    h = jnp.dot(x_ref[...], w1_ref[...], preferred_element_type=jnp.float32)

    # ---- BatchNorm1d, training-mode semantics (full-batch biased stats).
    # Only H is tiled, so per-tile per-feature statistics are exact. ----
    mean = jnp.mean(h, axis=0, keepdims=True)
    hc = h - mean
    var = jnp.mean(hc * hc, axis=0, keepdims=True)
    scale = gamma_ref[...] * lax.rsqrt(var + BN_EPS)   # gamma folded into rsqrt (EUP)

    # ---- affine + ReLU ----
    h_relu = jnp.maximum(hc * scale + beta_ref[...], 0.0)

    # ---- Linear 2 partial product; accumulate over h tiles directly in o_ref ----
    o_ref[...] += jnp.dot(h_relu.astype(jnp.bfloat16), w2_ref[...],
                          preferred_element_type=jnp.float32)


def _lane_divisors_desc(n, cap):
    """Divisors of n that are multiples of 128, descending, capped at `cap`."""
    out = []
    t = min((cap // 128) * 128, (n // 128) * 128)
    while t >= 128:
        if n % t == 0:
            out.append(t)
        t -= 128
    return out


def _working_set_bytes(B, D, th, tp):
    """Double-buffered VMEM working set for one grid step (bytes)."""
    return (2 * B * D * 2          # x (bf16)
            + 2 * D * th * 2       # w1 tile (bf16)
            + 2 * 2 * th * 4       # gamma + beta tiles (f32)
            + 2 * th * tp * 2      # w2 tile (bf16)
            + 2 * tp * 4           # b2 tile (f32)
            + 2 * B * tp * 4)      # output tile (f32)


def _plan_tiles(B, D, H, P, vmem_budget_bytes=24 << 20):
    """Prefer a single grid point (tp=P, th=H); shrink only if VMEM-constrained.

    Budget is conservative enough for v7x's 64 MiB physical VMEM and v5e/v6e
    scoped limits once vmem_limit_bytes is set accordingly.
    """
    tp_cands = [P] + [t for t in _lane_divisors_desc(P, 1024) if t != P]
    th_cands = [H] + [t for t in _lane_divisors_desc(H, 2048) if t != H]
    for tp in tp_cands:          # keep num_p = 1 whenever possible
        for th in th_cands:      # then the biggest h tile that fits
            ws = _working_set_bytes(B, D, th, tp)
            if ws <= vmem_budget_bytes:
                return th, tp, ws
    th, tp = th_cands[-1], tp_cands[-1]
    return th, tp, _working_set_bytes(B, D, th, tp)


def mlp_forward(x, w1, b1, gamma, beta, w2, b2, *, tile_h=None, tile_p=None):
    B, D = x.shape
    H = w1.shape[1]
    P = w2.shape[1]

    th_auto, tp_auto, ws = _plan_tiles(B, D, H, P)
    th = tile_h if tile_h is not None else th_auto
    tp = tile_p if tile_p is not None else tp_auto
    assert H % th == 0 and P % tp == 0, "tile sizes must divide H and P"
    num_h = H // th
    num_p = P // tp

    # b1 is intentionally unused: a Linear bias feeding training-mode BatchNorm
    # is exactly cancelled by the mean subtraction.
    del b1

    # bf16 MXU operands (fp32 accumulation inside the kernel); halves weight DMA.
    x_b = x.astype(jnp.bfloat16)
    w1_b = w1.astype(jnp.bfloat16)
    w2_b = w2.astype(jnp.bfloat16)

    # Scoped-VMEM limit sized to the working set (+4 MiB headroom), floor 16 MiB,
    # capped at 32 MiB so it is safe on every generation (v7x physical = 64 MiB).
    vmem_limit = min(32 << 20, max(16 << 20, int(ws) + (4 << 20)))

    return pl.pallas_call(
        mlp_kernel,
        out_shape=jax.ShapeDtypeStruct((B, P), jnp.float32),
        grid=(num_p, num_h),
        in_specs=[
            pl.BlockSpec((B, D), lambda p, h: (0, 0)),    # x  (fetched once)
            pl.BlockSpec((D, th), lambda p, h: (0, h)),   # w1
            pl.BlockSpec((1, th), lambda p, h: (0, h)),   # gamma
            pl.BlockSpec((1, th), lambda p, h: (0, h)),   # beta
            pl.BlockSpec((th, tp), lambda p, h: (h, p)),  # w2
            pl.BlockSpec((1, tp), lambda p, h: (0, p)),   # b2
        ],
        out_specs=pl.BlockSpec((B, tp), lambda p, h: (0, p)),
        compiler_params=pltpu.CompilerParams(
            dimension_semantics=("parallel", "arbitrary"),
            vmem_limit_bytes=vmem_limit),
    )(x_b, w1_b, gamma, beta, w2_b, b2)


def init_params(key, dim, hidden_size, projection_size):
    """Deterministic init mimicking torch's kaiming-uniform Linear init."""
    k1, k2, k3, k4 = jax.random.split(key, 4)
    bound1 = 1.0 / (dim ** 0.5)
    w1 = jax.random.uniform(k1, (dim, hidden_size), jnp.float32, -bound1, bound1)
    b1 = jax.random.uniform(k2, (1, hidden_size), jnp.float32, -bound1, bound1)
    gamma = jnp.ones((1, hidden_size), jnp.float32)   # BatchNorm1d defaults
    beta = jnp.zeros((1, hidden_size), jnp.float32)
    bound2 = 1.0 / (hidden_size ** 0.5)
    w2 = jax.random.uniform(k3, (hidden_size, projection_size), jnp.float32, -bound2, bound2)
    b2 = jax.random.uniform(k4, (1, projection_size), jnp.float32, -bound2, bound2)
    return w1, b1, gamma, beta, w2, b2


def reference_forward_f32(x, w1, b1, gamma, beta, w2, b2):
    h = x @ w1 + b1
    mean = h.mean(axis=0, keepdims=True)
    var = ((h - mean) ** 2).mean(axis=0, keepdims=True)
    h = (h - mean) / jnp.sqrt(var + BN_EPS) * gamma + beta
    h = jnp.maximum(h, 0.0)
    return h @ w2 + b2


def reference_forward_bf16_matmul(x, w1, b1, gamma, beta, w2, b2):
    # Mirrors the kernel's precision policy (bf16 MXU operands, f32 accumulation,
    # f32 BN/ReLU) for a tight numerical check. b1 included to show its
    # cancellation by BN is exact.
    h = jnp.dot(x.astype(jnp.bfloat16), w1.astype(jnp.bfloat16),
                preferred_element_type=jnp.float32) + b1
    mean = h.mean(axis=0, keepdims=True)
    var = ((h - mean) ** 2).mean(axis=0, keepdims=True)
    h = (h - mean) / jnp.sqrt(var + BN_EPS) * gamma + beta
    h = jnp.maximum(h, 0.0)
    return jnp.dot(h.astype(jnp.bfloat16), w2.astype(jnp.bfloat16),
                   preferred_element_type=jnp.float32) + b2


if __name__ == "__main__":
    # Small shapes consistent with MLP(dim, projection_size, hidden_size)
    batch, dim, hidden_size, projection_size = 8, 32, 128, 256

    key = jax.random.PRNGKey(0)
    kx, kp = jax.random.split(key)
    x = jax.random.normal(kx, (batch, dim), jnp.float32)
    params = init_params(kp, dim, hidden_size, projection_size)

    # Tile planner collapses this to a single grid point (th=H, tp=P, grid=(1,1)):
    # layer 1 runs exactly once, every operand is DMA'd exactly once.
    out = mlp_forward(x, *params)
    out = jax.block_until_ready(out)
    assert out.shape == (batch, projection_size)

    # Tight check against a reference using the same bf16-matmul/f32-accum policy.
    ref_tight = reference_forward_bf16_matmul(x, *params)
    assert jnp.allclose(out, ref_tight, atol=2e-3, rtol=2e-3), "mismatch vs bf16 reference"

    # Loose check against the pure-f32 PyTorch-equivalent math (bf16 matmul drift only).
    ref_f32 = reference_forward_f32(x, *params)
    assert jnp.allclose(out, ref_f32, atol=1e-1, rtol=1e-1), "mismatch vs f32 reference"

    print("KERNEL_OK")
</pallas_src>

<mosaic_0001>
module attributes {stable_mosaic.version = 11 : i64} {
  func.func @mlp_kernel(%arg0: i32, %arg1: i32, %arg2: memref<8x32xbf16, #tpu.memory_space<vmem>>, %arg3: memref<32x128xbf16, #tpu.memory_space<vmem>>, %arg4: memref<1x128xf32, #tpu.memory_space<vmem>>, %arg5: memref<1x128xf32, #tpu.memory_space<vmem>>, %arg6: memref<128x256xbf16, #tpu.memory_space<vmem>>, %arg7: memref<1x256xf32, #tpu.memory_space<vmem>>, %arg8: memref<8x256xf32, #tpu.memory_space<vmem>>) attributes {dimension_semantics = [#tpu.dimension_semantics<parallel>, #tpu.dimension_semantics<arbitrary>], iteration_bounds = array<i64: 1, 1>, scalar_prefetch = 0 : i64, scratch_operands = 0 : i64, tpu.core_type = #tpu.core_type<tc>, window_params = [{pipeline_mode = #tpu.pipeline_mode<synchronous>, transform_indices = @transform_0, window_bounds = array<i64: 8, 32>}, {transform_indices = @transform_1, window_bounds = array<i64: 32, 128>}, {transform_indices = @transform_2, window_bounds = array<i64: 1, 128>}, {transform_indices = @transform_3, window_bounds = array<i64: 1, 128>}, {transform_indices = @transform_4, window_bounds = array<i64: 128, 256>}, {transform_indices = @transform_5, window_bounds = array<i64: 1, 256>}, {transform_indices = @transform_6, window_bounds = array<i64: 8, 256>}]} {
    %c0_i32 = arith.constant 0 : i32
    %0 = arith.cmpi eq, %arg1, %c0_i32 : i32
    %1 = arith.extui %0 : i1 to i32
    %c0_i32_0 = arith.constant 0 : i32
    %2 = arith.cmpi ne, %1, %c0_i32_0 : i32
    scf.if %2 {
      %c0_21 = arith.constant 0 : index
      %c0_22 = arith.constant 0 : index
      %35 = vector.load %arg7[%c0_21, %c0_22] : memref<1x256xf32, #tpu.memory_space<vmem>>, vector<1x256xf32>
      %36 = vector.shape_cast %35 : vector<1x256xf32> to vector<1x256xf32>
      %37 = vector.broadcast %36 : vector<1x256xf32> to vector<8x256xf32>
      %c0_23 = arith.constant 0 : index
      %c0_24 = arith.constant 0 : index
      %38 = vector.load %arg8[%c0_23, %c0_24] : memref<8x256xf32, #tpu.memory_space<vmem>>, vector<8x256xf32>
      tpu.vector_store %arg8[%c0_23, %c0_24], %37 {strides = array<i32>} : memref<8x256xf32, #tpu.memory_space<vmem>>, vector<8x256xf32>,
    } else {
    }
    %c0 = arith.constant 0 : index
    %c0_1 = arith.constant 0 : index
    %3 = vector.load %arg2[%c0, %c0_1] : memref<8x32xbf16, #tpu.memory_space<vmem>>, vector<8x32xbf16>
    %c0_2 = arith.constant 0 : index
    %c0_3 = arith.constant 0 : index
    %4 = vector.load %arg3[%c0_2, %c0_3] : memref<32x128xbf16, #tpu.memory_space<vmem>>, vector<32x128xbf16>
    %cst = arith.constant dense<0.000000e+00> : vector<8x128xf32>
    %5 = tpu.matmul %3, %4, %cst {dimension_numbers = #tpu.dot_dimension_numbers<[1], [0], [0], [1], [0, 0, 1, 1], [], []>} : vector<8x32xbf16>, vector<32x128xbf16>, vector<8x128xf32> -> vector<8x128xf32>
    %cst_4 = arith.constant dense<0.000000e+00> : vector<128xf32>
    %6 = vector.multi_reduction <add>, %5, %cst_4 [0] : vector<8x128xf32> to vector<128xf32>
    %7 = vector.shape_cast %6 : vector<128xf32> to vector<1x128xf32>
    %cst_5 = arith.constant 8.000000e+00 : f32
    %8 = vector.broadcast %cst_5 : f32 to vector<1x128xf32>
    %9 = arith.divf %7, %8 : vector<1x128xf32>
    %10 = vector.broadcast %9 : vector<1x128xf32> to vector<8x128xf32>
    %11 = arith.subf %5, %10 : vector<8x128xf32>
    %12 = arith.mulf %11, %11 : vector<8x128xf32>
    %cst_6 = arith.constant dense<0.000000e+00> : vector<128xf32>
    %13 = vector.multi_reduction <add>, %12, %cst_6 [0] : vector<8x128xf32> to vector<128xf32>
    %14 = vector.shape_cast %13 : vector<128xf32> to vector<1x128xf32>
    %cst_7 = arith.constant 8.000000e+00 : f32
    %15 = vector.broadcast %cst_7 : f32 to vector<1x128xf32>
    %16 = arith.divf %14, %15 : vector<1x128xf32>
    %c0_8 = arith.constant 0 : index
    %c0_9 = arith.constant 0 : index
    %17 = vector.load %arg4[%c0_8, %c0_9] : memref<1x128xf32, #tpu.memory_space<vmem>>, vector<1x128xf32>
    %cst_10 = arith.constant 9.99999974E-6 : f32
    %18 = vector.broadcast %cst_10 : f32 to vector<1x128xf32>
    %19 = arith.addf %16, %18 : vector<1x128xf32>
    %20 = math.rsqrt %19 : vector<1x128xf32>
    %21 = arith.mulf %17, %20 : vector<1x128xf32>
    %22 = vector.broadcast %21 : vector<1x128xf32> to vector<8x128xf32>
    %23 = arith.mulf %11, %22 : vector<8x128xf32>
    %c0_11 = arith.constant 0 : index
    %c0_12 = arith.constant 0 : index
    %24 = vector.load %arg5[%c0_11, %c0_12] : memref<1x128xf32, #tpu.memory_space<vmem>>, vector<1x128xf32>
    %25 = vector.broadcast %24 : vector<1x128xf32> to vector<8x128xf32>
    %26 = arith.addf %23, %25 : vector<8x128xf32>
    %cst_13 = arith.constant 0.000000e+00 : f32
    %27 = vector.broadcast %cst_13 : f32 to vector<8x128xf32>
    %28 = arith.maximumf %26, %27 : vector<8x128xf32>
    %c0_14 = arith.constant 0 : index
    %c0_15 = arith.constant 0 : index
    %29 = vector.load %arg8[%c0_14, %c0_15] : memref<8x256xf32, #tpu.memory_space<vmem>>, vector<8x256xf32>
    %30 = arith.truncf %28 : vector<8x128xf32> to vector<8x128xbf16>
    %c0_16 = arith.constant 0 : index
    %c0_17 = arith.constant 0 : index
    %31 = vector.load %arg6[%c0_16, %c0_17] : memref<128x256xbf16, #tpu.memory_space<vmem>>, vector<128x256xbf16>
    %cst_18 = arith.constant dense<0.000000e+00> : vector<8x256xf32>
    %32 = tpu.matmul %30, %31, %cst_18 {dimension_numbers = #tpu.dot_dimension_numbers<[1], [0], [0], [1], [0, 0, 1, 1], [], []>} : vector<8x128xbf16>, vector<128x256xbf16>, vector<8x256xf32> -> vector<8x256xf32>
    %33 = arith.addf %29, %32 : vector<8x256xf32>
    %c0_19 = arith.constant 0 : index
    %c0_20 = arith.constant 0 : index
    %34 = vector.load %arg8[%c0_19, %c0_20] : memref<8x256xf32, #tpu.memory_space<vmem>>, vector<8x256xf32>
    tpu.vector_store %arg8[%c0_19, %c0_20], %33 {strides = array<i32>} : memref<8x256xf32, #tpu.memory_space<vmem>>, vector<8x256xf32>,
    return
  }
  func.func @transform_0(%arg0: i32, %arg1: i32) -> (i32, i32) {
    %c0_i32 = arith.constant 0 : i32
    %c0_i32_0 = arith.constant 0 : i32
    %c0_i32_1 = arith.constant 0 : i32
    return %c0_i32, %c0_i32_0 : i32, i32
  }
  func.func @transform_1(%arg0: i32, %arg1: i32) -> (i32, i32) {
    %c0_i32 = arith.constant 0 : i32
    %c0_i32_0 = arith.constant 0 : i32
    return %c0_i32, %arg1 : i32, i32
  }
  func.func @transform_2(%arg0: i32, %arg1: i32) -> (i32, i32) {
    %c0_i32 = arith.constant 0 : i32
    %c0_i32_0 = arith.constant 0 : i32
    return %c0_i32, %arg1 : i32, i32
  }
  func.func @transform_3(%arg0: i32, %arg1: i32) -> (i32, i32) {
    %c0_i32 = arith.constant 0 : i32
    %c0_i32_0 = arith.constant 0 : i32
    return %c0_i32, %arg1 : i32, i32
  }
  func.func @transform_4(%arg0: i32, %arg1: i32) -> (i32, i32) {
    %c0_i32 = arith.constant 0 : i32
    return %arg1, %arg0 : i32, i32
  }
  func.func @transform_5(%arg0: i32, %arg1: i32) -> (i32, i32) {
    %c0_i32 = arith.constant 0 : i32
    %c0_i32_0 = arith.constant 0 : i32
    return %c0_i32, %arg0 : i32, i32
  }
  func.func @transform_6(%arg0: i32, %arg1: i32) -> (i32, i32) {
    %c0_i32 = arith.constant 0 : i32
    %c0_i32_0 = arith.constant 0 : i32
    return %c0_i32, %arg0 : i32, i32
  }
}

</mosaic_0001>

<bundles_post_ra>
// kernel: tpu_custom_call.1
= control target key start
LH: loop header
LB: loop body
LE: loop exit
PB: predicated region body
PF: predicated region fallthrough
CT: control target
= control target key end

     0   :  { %11 = vsyncpa [#allocation3], 0  ;;  %s607_s0 = inlined_call_operand.hbm [shape: bf16[8,32], index: 0, kind: input, shape index: {}]   ;;  %s608_s1 = inlined_call_operand.hbm [shape: bf16[32,128], index: 1, kind: input, shape index: {}]   ;;  %s609_s2 = inlined_call_operand.vmem [shape: f32[1,128], index: 2, kind: input, shape index: {}]   ;;  %s610_s3 = inlined_call_operand.vmem [shape: f32[1,128], index: 3, kind: input, shape index: {}]   ;;  %s611_s4 = inlined_call_operand.hbm [shape: bf16[128,256], index: 4, kind: input, shape index: {}]   ;;  %s612_s5 = inlined_call_operand.vmem [shape: f32[1,256], index: 5, kind: input, shape index: {}]   ;;  %s613_s6 = inlined_call_operand.hbm [shape: f32[8,256], index: 6, kind: output, shape index: {}]  }
   0x1   :  { %12 = vsyncpa [#allocation6], 0 }
   0x2   :  { %13 = vsyncpa [#allocation4], 0  ;;  %s504_s21 = smov [#allocation5]   ;;  %s410_s25 = scalar_lea.hbm %s608_s1, 256 }
   0x3   :  { %s29_s22 = sshll.u32 %s504_s21, 4  ;;  %p411_p0 = scmp.ne.s32.totalorder %s608_s1, %s410_s25  ;;  %s30_s22 = int_to_ptr.vmem [resolvable:$true] %s29_s22 }
   0x4   :  { %p414_p1 = scmp.lt.u32.totalorder %s410_s25, %s608_s1 }
   0x6   :  { %p416_p2 = pnand %p414_p1, %p411_p0 }
   0x8   :  { %419 = shalt.err (!%p416_p2)
}
   0x9   :  { %s420_s30 = scalar_lea.vmem %s30_s22, 256  ;;  %p425_p4 = scmp.lt.s32.totalorder %s30_s22, %s30_s22 }
   0xa   :  { %p421_p3 = scmp.ne.s32.totalorder %s30_s22, %s420_s30  ;;  %p426_p5 = scmp.lt.s32.totalorder %s420_s30, %s420_s30 }
   0xc   :  { %p427_p6 = por %p426_p5, %p425_p4 }
   0xe   :  { %p428_p7 = pnand %p427_p6, %p421_p3 }
  0x10   :  { %431 = shalt.err (!%p428_p7)
}
  0x11   :  { %s505_s7 = smov 64   ;;  %s506_s8 = smov 4  }
  0x12   :  { %35 = dma.hbm_to_vmem [thread:$0]  %s608_s1, 256, %s30_s22, [#allocation6], %s505_s7, %s505_s7, %s506_s8  }
  0x13   :  { %s507_s11 = smov [#allocation2]   ;;  %s508_s13 = smov [#allocation7]  }
  0x14   :  { %s20_s12 = sshll.u32 %s507_s11, 4  ;;  %s45_s14 = sshll.u32 %s508_s13, 4  ;;  %s21_s12 = int_to_ptr.vmem [resolvable:$true] %s20_s12  ;;  %s46_s14 = int_to_ptr.vmem [resolvable:$true] %s45_s14 }
  0x15   :  { %s432_s17 = scalar_lea.hbm %s607_s0, 64 }
  0x16   :  { %p433_p8 = scmp.ne.s32.totalorder %s607_s0, %s432_s17  ;;  %p436_p9 = scmp.lt.u32.totalorder %s432_s17, %s607_s0 }
  0x18   :  { %p438_p10 = pnand %p436_p9, %p433_p8 }
  0x1a   :  { %441 = shalt.err (!%p438_p10)
}
  0x1b   :  { %s442_s1 = scalar_lea.vmem %s21_s12, 64  ;;  %p447_p12 = scmp.lt.s32.totalorder %s21_s12, %s21_s12 }
  0x1c   :  { %p443_p11 = scmp.ne.s32.totalorder %s21_s12, %s442_s1  ;;  %p448_p13 = scmp.lt.s32.totalorder %s442_s1, %s442_s1 }
  0x1e   :  { %p449_p0 = por %p448_p13, %p447_p12 }
  0x20   :  { %p450_p1 = pnand %p449_p0, %p443_p11 }
  0x22   :  { %453 = shalt.err (!%p450_p1)
}
  0x23   :  { %23 = dma.hbm_to_vmem [thread:$0]  %s607_s0, 64, %s21_s12, [#allocation3]  }
  0x24   :  { %s454_s26 = scalar_lea.hbm %s611_s4, 2048 }
  0x25   :  { %p455_p2 = scmp.ne.s32.totalorder %s611_s4, %s454_s26  ;;  %p458_p3 = scmp.lt.u32.totalorder %s454_s26, %s611_s4 }
  0x27   :  { %p460_p4 = pnand %p458_p3, %p455_p2 }
  0x29   :  { %463 = shalt.err (!%p460_p4)
}
  0x2a   :  { %s464_s7 = scalar_lea.vmem %s46_s14, 2048  ;;  %p469_p6 = scmp.lt.s32.totalorder %s46_s14, %s46_s14 }
  0x2b   :  { %p465_p5 = scmp.ne.s32.totalorder %s46_s14, %s464_s7  ;;  %p470_p7 = scmp.lt.s32.totalorder %s464_s7, %s464_s7 }
  0x2d   :  { %p471_p8 = por %p470_p7, %p469_p6 }
  0x2f   :  { %p472_p9 = pnand %p471_p8, %p465_p5 }
  0x31   :  { %475 = shalt.err (!%p472_p9)
}
  0x32   :  { %s509_s0 = smov 128   ;;  %s510_s8 = smov 8  }
  0x33   :  { %51 = dma.hbm_to_vmem [thread:$0]  %s611_s4, 2048, %s46_s14, [#allocation6], %s509_s0, %s509_s0, %s510_s8  }
  0x34   :  { %498 = dma.done.wait [#allocation3], 64  }
  0x35   :  { %499 = vsyncadd [#allocation3], 4294967232 }
  0x36   :  { %500 = dma.done.wait [#allocation6], 2304  }
  0x37   :  { %501 = vsyncadd [#allocation6], 4294964992  ;;  %v511_v0 = vmov 0.0   ;;  %vm512_vm0 = vmmov 0   ;;  %v382_v1 = vld [vmem:[#allocation5] sm:$0xff]   ;;  %v383_v2 = vld [vmem:[#allocation5 + $0x8] sm:$0xff]   ;;  %v70_v42 = vlaneseq }
  0x38   :  { %363 = vmatprep.subr.bf16.mxu0 %v511_v0  ;;  %367 = vmatprep.mubr.msk.bf16.mxu0 %vm512_vm0, %v511_v0  ;;  %v82_v3 = vld [vmem:[#allocation2] sm:$0xf]  ;;  %vm99_vm1 = vcmask 261120   ;;  %v386_v5 = vld [vmem:[#allocation7] ss:$8 sps:$4 sm:$0xff]   ;;  %v513_v20 = vmov 0  }
  0x39   :  { %364 = vmatpush3.bf16.msra.mxu0 %v382_v1  ;;  %v384_v4 = vld [vmem:[#allocation7 + $0x4] ss:$8 sps:$4 sm:$0xff]   ;;  %v387_v6 = vld [vmem:[#allocation7 + $0x14] ss:$8 sps:$4 sm:$0xff]   ;;  %v389_v7 = vld [vmem:[#allocation7 + $0x10] ss:$8 sps:$4 sm:$0xff]   ;;  %311 = vmatprep.mubr.bf16.mxu1 %v513_v20 }
  0x3a   :  { %365 = vmatprep.subr.bf16.mxu0 %v511_v0  ;;  %279 = vmatprep.subr.bf16.mxu1 %v384_v4  ;;  %v390_v8 = vld [vmem:[#allocation7 + $0x24] ss:$8 sps:$4 sm:$0xff]   ;;  %v392_v9 = vld [vmem:[#allocation7 + $0x20] ss:$8 sps:$4 sm:$0xff]   ;;  %v393_v10 = vld [vmem:[#allocation7 + $0x34] ss:$8 sps:$4 sm:$0xff]  }
  0x3b   :  { %280 = vmatpush1.bf16.msra.mxu1 %v386_v5  ;;  %v395_v11 = vld [vmem:[#allocation7 + $0x30] ss:$8 sps:$4 sm:$0xff]   ;;  %v396_v12 = vld [vmem:[#allocation7 + $0x44] ss:$8 sps:$4 sm:$0xff]   ;;  %v398_v13 = vld [vmem:[#allocation7 + $0x40] ss:$8 sps:$4 sm:$0xff]  }
  0x3c   :  { %281 = vmatprep.subr.bf16.mxu1 %v387_v6  ;;  %v399_v14 = vld [vmem:[#allocation7 + $0x54] ss:$8 sps:$4 sm:$0xff]   ;;  %v401_v15 = vld [vmem:[#allocation7 + $0x50] ss:$8 sps:$4 sm:$0xff]   ;;  %v402_v16 = vld [vmem:[#allocation7 + $0x64] ss:$8 sps:$4 sm:$0xff]  }
  0x3d   :  { %366 = vmatpush3.bf16.msra.mxu0 %v383_v2  ;;  %v404_v17 = vld [vmem:[#allocation7 + $0x60] ss:$8 sps:$4 sm:$0xff]   ;;  %v405_v18 = vld [vmem:[#allocation7 + $0x74] ss:$8 sps:$4 sm:$0xff]   ;;  %v407_v19 = vld [vmem:[#allocation7 + $0x70] ss:$8 sps:$4 sm:$0xff]  }
  0x3e   :  { %v71_v43 = vshrl.u32 %v70_v42, 7  ;;  %v160_v44 = vld [vmem:[%s609_s2] sm:$0x1]  ;;  %s514_s2 = smov [#allocation8]  }
  0x3f   :  { %282 = vmatpush1.bf16.msra.mxu1 %v389_v7  ;;  %v343_v49 = vld [vmem:[%s610_s3] ss:$0 sm:$0xff]  ;;  %s330_s16 = sshll.u32 %s514_s2, 4  ;;  %s331_s16 = int_to_ptr.vmem [resolvable:$true] %s330_s16 }
  0x40   :  { %368 = vmatmul.mubr.msk.bf16.vlgmr.msra.gmra.mrb[0].mxu0 %vm99_vm1, %v82_v3  ;;  %283 = vmatprep.subr.bf16.mxu1 %v390_v8  ;;  %v72_v45 = vsub.s32 0, %v71_v43  ;;  %v68_v54 = vld [vmem:[%s612_s5] sm:$0x3]  ;;  %v76_v55 = vsub.s32 1, %v71_v43  ;;  %s476_s3 = scalar_lea.vmem %s331_s16, 256  ;;  %p481_p11 = scmp.lt.s32.totalorder %s331_s16, %s331_s16 }
  0x41   :  { %p477_p10 = scmp.ne.s32.totalorder %s331_s16, %s476_s3  ;;  %p482_p12 = scmp.lt.s32.totalorder %s476_s3, %s476_s3 }
  0x42   :  { %v73_v56 = vrot.slane %v68_v54, %v72_v45  ;;  %v77_v57 = vrot.slane %v68_v54, %v76_v55 }
  0x43   :  { %284 = vmatpush1.bf16.msra.mxu1 %v392_v9  ;;  %p483_p13 = por %p482_p12, %p481_p11 }
  0x44   :  { %285 = vmatprep.subr.bf16.mxu1 %v393_v10 }
  0x45   :  { %p484_p0 = pnand %p483_p13, %p477_p10 }
  0x47   :  { %286 = vmatpush1.bf16.msra.mxu1 %v395_v11 }
  0x48   :  { %287 = vmatprep.subr.bf16.mxu1 %v396_v12 }
  0x4b   :  { %288 = vmatpush1.bf16.msra.mxu1 %v398_v13 }
  0x4c   :  { %289 = vmatprep.subr.bf16.mxu1 %v399_v14 }
  0x4f   :  { %290 = vmatpush1.bf16.msra.mxu1 %v401_v15 }
  0x50   :  { %291 = vmatprep.subr.bf16.mxu1 %v402_v16 }
  0x53   :  { %292 = vmatpush1.bf16.msra.mxu1 %v404_v17 }
  0x54   :  { %293 = vmatprep.subr.bf16.mxu1 %v405_v18 }
  0x57   :  { %294 = vmatpush1.bf16.msra.mxu1 %v407_v19 }
 0x113   :  { %v137_v21 = vpop.f32.mrb[0].mxu0 }
 0x114   :  { %v143_v22 = vrot.slane %v137_v21, 4  ;;  %v369_v23 = vpop.f32.mrb[1].mxu0 }
 0x115   :  { %v140_v24 = vpop.f32.mrb[2].mxu0 }
 0x116   :  { %v144_v25 = vadd.f32 %v143_v22, %v137_v21  ;;  %v370_v26 = vpop.f32.mrb[3].mxu0 }
 0x118   :  { %v145_v27 = vrot.slane %v144_v25, 2 }
 0x11a   :  { %v146_v28 = vadd.f32 %v145_v27, %v144_v25 }
 0x11c   :  { %v147_v29 = vrot.slane %v146_v28, 1 }
 0x11e   :  { %v148_v30 = vadd.f32 %v147_v29, %v146_v28 }
 0x120   :  { %v150_v31 = vmul.f32 0.125, %v148_v30 }
 0x122   :  { %v151_v32 = vsub.f32 %v137_v21, %v150_v31 }
 0x124   :  { %v152_v33 = vmul.f32 %v151_v32, %v151_v32 }
 0x126   :  { %v153_v34 = vrot.slane %v152_v33, 4 }
 0x128   :  { %v154_v35 = vadd.f32 %v153_v34, %v152_v33 }
 0x12a   :  { %v155_v36 = vrot.slane %v154_v35, 2 }
 0x12c   :  { %v156_v37 = vadd.f32 %v155_v36, %v154_v35 }
 0x12e   :  { %v157_v38 = vrot.slane %v156_v37, 1 }
 0x130   :  { %v158_v39 = vadd.f32 %v157_v38, %v156_v37 }
 0x132   :  { %v159_v40 = vmul.f32 0.125, %v158_v39 }
 0x134   :  { %v161_v41 = vadd.f32 1e-05, %v159_v40 }
 0x136   :  { %408 = vrsqrt.f32 %v161_v41 }
 0x140   :  { %v409_v46 = vpop.eup %408 }
 0x141   :  { %v163_v47 = vmul.f32 %v409_v46, %v160_v44 }
 0x143   :  { %v168_v48 = vrot.slane %v163_v47, %v72_v45 }
 0x145   :  { %v170_v50 = vmul.f32 %v168_v48, %v151_v32 }
 0x147   :  { %v178_v51 = vadd.f32 %v343_v49, %v170_v50 }
 0x149   :  { %v179_v52 = vmax.f32 %v178_v51, 0.0 }
 0x14b   :  { %v182_v53 = vpack.c.bf16 %v179_v52, %v179_v52 }
 0x14d   :  { %312 = vmatmul.mubr.bf16.vlgmr.msra.gmra.mrb[0].mxu1 %v182_v53 }
 0x220   :  { %v313_v58 = vpop.f32.mrb[0].mxu1 }
 0x221   :  { %v320_v59 = vadd.f32 %v313_v58, %v73_v56  ;;  %v315_v60 = vpop.f32.mrb[1].mxu1 }
 0x222   :  { %v321_v61 = vadd.f32 %v315_v60, %v77_v57  ;;  %v317_v62 = vpop.f32.mrb[2].mxu1 }
 0x223   :  { %322 = vst [vmem:[#allocation8] sm:$0xff] %v320_v59  ;;  %v318_v63 = vpop.f32.mrb[3].mxu1 }
 0x224   :  { %323 = vst [vmem:[#allocation8 + $0x8] sm:$0xff] %v321_v61 }
 0x225   :  { %487 = shalt.err (!%p484_p0)
}
 0x226   :  { %s488_s18 = scalar_lea.hbm %s613_s6, 256 }
 0x227   :  { %p489_p1 = scmp.ne.s32.totalorder %s613_s6, %s488_s18  ;;  %p492_p2 = scmp.lt.u32.totalorder %s488_s18, %s613_s6 }
 0x229   :  { %p494_p3 = pnand %p492_p2, %p489_p1 }
 0x22b   :  { %497 = shalt.err (!%p494_p3)
}
 0x22c   :  { %333 = dma.vmem_to_hbm [thread:$0]  %s331_s16, 256, %s613_s6, [#allocation4]  }
 0x22d   :  { %502 = dma.done.wait [#allocation4], 256  }
 0x22e   :  { %503 = vsyncadd [#allocation4], 4294967040 }
 0x22f   :  { %337 = vsyncpa [#allocation3], 1 }
 0x230   :  { %338 = vsyncpa [#allocation6], 1 }
 0x231   :  { %339 = vsyncpa [#allocation4], 1 }

</bundles_post_ra>
